<compile_context>
chip_gen: v6e
topology: v6e:2x2x1
jax: 0.10.0
libtpu: 0.0.40
codegen_flags: <defaults>
</compile_context>

<pallas_src>
import functools

import jax
import jax.numpy as jnp
from jax import lax
from jax.experimental import pallas as pl
from jax.experimental.pallas import tpu as pltpu

_INV_SQRT2 = 0.7071067811865476  # 1/sqrt(2), folded into a constant multiply


def _bert_intermediate_kernel(x_ref, w_ref, b_ref, o_ref, *, compute_dtype):
    """One (tm, tn) output tile of gelu(x @ W^T + b).

    x_ref: (tm, H)  activation row tile (cast to compute_dtype for the MXU)
    w_ref: (H, tn)  pre-transposed / pre-cast weight column tile
    b_ref: (1, tn)  bias column tile (f32)
    o_ref: (tm, tn) output tile
    """
    x = x_ref[...].astype(compute_dtype)
    # MXU matmul: bf16 operands, f32 accumulation.
    h = jnp.dot(x, w_ref[...], preferred_element_type=jnp.float32)
    h = h + b_ref[...].astype(jnp.float32)
    # Exact erf-GELU, matching torch's _gelu_python; stays in f32.
    # TODO(synk): on v5e the erf polynomial is VALU-heavy; a tanh-approx GELU would
    # move it to the otherwise-idle EUP slot, but that changes the module's math.
    h = h * 0.5 * (1.0 + lax.erf(h * _INV_SQRT2))
    o_ref[...] = h.astype(o_ref.dtype)


def prepare_bert_intermediate_params(w, b, compute_dtype=jnp.bfloat16):
    """One-time parameter prep (do at load time, NOT per forward call):
    transpose the PyTorch (I, H) Linear weight to (H, I) and cast to the MXU dtype."""
    wt = jnp.asarray(w).T.astype(compute_dtype)             # (H, I)
    b2 = jnp.asarray(b).reshape(1, -1).astype(jnp.float32)  # (1, I)
    return wt, b2


def _round_up(x, m):
    return ((x + m - 1) // m) * m


def _vmem_capacity_bytes():
    try:
        return int(pltpu.get_tpu_info().vmem_capacity_bytes)
    except Exception:
        return 64 * 1024 * 1024  # conservative fallback (v7x per-TC capacity)


def _choose_tiles(rows, H, I, x_itemsize, out_itemsize, w_itemsize, vmem_cap,
                  tm=None, tn=None):
    budget = int(vmem_cap * 0.70)  # leave headroom for Mosaic scratch / spills

    def need(tm_, tn_):
        return (2 * tm_ * H * x_itemsize          # x tiles (double buffered)
                + 2 * H * tn_ * w_itemsize        # weight tile buffers
                + 2 * 8 * tn_ * 4                 # bias (sublane-padded)
                + 2 * tm_ * tn_ * out_itemsize)   # output tiles (double buffered)

    if tm is None:
        # 128 MiB-VMEM chips (v5e/v6e): big 512-row tiles; 64 MiB (v7x): 256.
        tm = 512 if vmem_cap >= (100 << 20) else 256
    if rows <= tm:
        tm = rows            # single full-extent row block (always layout-legal)
    if tn is None:
        tn = I
    # Shrink the intermediate-dim tile (multiples of 256) until the working set
    # fits, then shrink tm if still necessary.
    while tn > 256 and need(tm, tn) > budget:
        tn = max(256, _round_up(tn // 2, 256))
    while tm > 256 and need(tm, tn) > budget:
        tm = max(256, tm // 2)
    return tm, tn, need(tm, tn)


def bert_intermediate_forward(x, wt, b2, *, tm=None, tn=None,
                              compute_dtype=jnp.bfloat16):
    """BertIntermediate forward: gelu(x @ W^T + b).

    x:  (..., H) activations.
    wt: (H, I)   pre-transposed weight (from prepare_bert_intermediate_params).
    b2: (1, I)   f32 bias.
    Returns (..., I) in x.dtype.
    """
    *lead, H = x.shape
    Hw, I = wt.shape
    assert H == Hw, f"hidden mismatch: x has {H}, weight has {Hw}"
    rows = 1
    for d in lead:
        rows *= d

    x2 = x.reshape(rows, H)

    vmem_cap = _vmem_capacity_bytes()
    tm, tn, need = _choose_tiles(
        rows, H, I,
        x2.dtype.itemsize, x.dtype.itemsize, jnp.dtype(compute_dtype).itemsize,
        vmem_cap, tm, tn)

    n_row_tiles = pl.cdiv(rows, tm)   # partial edge tile: writes are masked by Pallas
    n_col_tiles = pl.cdiv(I, tn)

    # Actual working-set + headroom, capped below the device's physical VMEM.
    vmem_limit = int(min(vmem_cap - (4 << 20),
                         max(32 << 20, need + (8 << 20))))

    cost = pl.CostEstimate(
        flops=2 * rows * H * I,
        transcendentals=rows * I,
        bytes_accessed=(x2.size * x2.dtype.itemsize
                        + wt.size * wt.dtype.itemsize
                        + b2.size * b2.dtype.itemsize
                        + rows * I * x.dtype.itemsize))

    kernel = functools.partial(_bert_intermediate_kernel,
                               compute_dtype=compute_dtype)

    # Grid order (col, row): row axis is innermost, so the weight/bias block
    # indices only change with the outer axis and stay resident across row tiles.
    out2 = pl.pallas_call(
        kernel,
        out_shape=jax.ShapeDtypeStruct((rows, I), x.dtype),
        grid_spec=pltpu.PrefetchScalarGridSpec(
            num_scalar_prefetch=0,
            grid=(n_col_tiles, n_row_tiles),
            in_specs=[
                pl.BlockSpec((tm, H), lambda j, i: (i, 0)),   # activation row tile
                pl.BlockSpec((H, tn), lambda j, i: (0, j)),   # weight column tile
                pl.BlockSpec((1, tn), lambda j, i: (0, j)),   # bias column tile
            ],
            out_specs=pl.BlockSpec((tm, tn), lambda j, i: (i, j)),
        ),
        compiler_params=pltpu.CompilerParams(
            dimension_semantics=("parallel", "parallel"),
            vmem_limit_bytes=vmem_limit),
        cost_estimate=cost,
    )(x2, wt, b2)

    return out2.reshape(*lead, I)


if __name__ == "__main__":
    # Small config consistent with the module: hidden_size=32, intermediate_size=64.
    B, S, H, I = 2, 8, 32, 64
    key = jax.random.PRNGKey(0)
    kx, kw, kb = jax.random.split(key, 3)

    x = jax.random.normal(kx, (B, S, H), dtype=jnp.float32)
    w = jax.random.normal(kw, (I, H), dtype=jnp.float32) * 0.05   # torch Linear layout (I, H)
    b = jax.random.normal(kb, (I,), dtype=jnp.float32) * 0.01

    # One-time parameter prep (transpose + bf16 cast), then the kernel call.
    wt, b2 = prepare_bert_intermediate_params(w, b)
    out = bert_intermediate_forward(x, wt, b2)
    out = jax.block_until_ready(out)
    assert out.shape == (B, S, I)

    # True f32 reference (PyTorch _gelu_python semantics); tolerance accounts for
    # the kernel's bf16 MXU operands at H=32.
    h = jnp.dot(x, w.T, preferred_element_type=jnp.float32) + b
    ref = h * 0.5 * (1.0 + lax.erf(h * _INV_SQRT2))
    max_err = float(jnp.max(jnp.abs(out - ref)))
    assert jnp.allclose(out, ref, atol=1e-2, rtol=1e-2), f"mismatch, max_err={max_err}"
    print("KERNEL_OK")
</pallas_src>

<mosaic_0001>
module attributes {stable_mosaic.version = 11 : i64} {
  func.func @_bert_intermediate_kernel(%arg0: i32, %arg1: i32, %arg2: memref<16x32xf32, #tpu.memory_space<vmem>>, %arg3: memref<32x64xbf16, #tpu.memory_space<vmem>>, %arg4: memref<1x64xf32, #tpu.memory_space<vmem>>, %arg5: memref<16x64xf32, #tpu.memory_space<vmem>>) attributes {dimension_semantics = [#tpu.dimension_semantics<parallel>, #tpu.dimension_semantics<parallel>], iteration_bounds = array<i64: 1, 1>, scalar_prefetch = 0 : i64, scratch_operands = 0 : i64, tpu.core_type = #tpu.core_type<tc>, window_params = [{transform_indices = @transform_0, window_bounds = array<i64: 16, 32>}, {transform_indices = @transform_1, window_bounds = array<i64: 32, 64>}, {transform_indices = @transform_2, window_bounds = array<i64: 1, 64>}, {transform_indices = @transform_3, window_bounds = array<i64: 16, 64>}]} {
    %c0 = arith.constant 0 : index
    %c0_0 = arith.constant 0 : index
    %0 = vector.load %arg2[%c0, %c0_0] : memref<16x32xf32, #tpu.memory_space<vmem>>, vector<16x32xf32>
    %1 = arith.truncf %0 : vector<16x32xf32> to vector<16x32xbf16>
    %c0_1 = arith.constant 0 : index
    %c0_2 = arith.constant 0 : index
    %2 = vector.load %arg3[%c0_1, %c0_2] : memref<32x64xbf16, #tpu.memory_space<vmem>>, vector<32x64xbf16>
    %cst = arith.constant dense<0.000000e+00> : vector<16x64xf32>
    %3 = tpu.matmul %1, %2, %cst {dimension_numbers = #tpu.dot_dimension_numbers<[1], [0], [0], [1], [0, 0, 1, 1], [], []>} : vector<16x32xbf16>, vector<32x64xbf16>, vector<16x64xf32> -> vector<16x64xf32>
    %c0_3 = arith.constant 0 : index
    %c0_4 = arith.constant 0 : index
    %4 = vector.load %arg4[%c0_3, %c0_4] : memref<1x64xf32, #tpu.memory_space<vmem>>, vector<1x64xf32>
    %5 = vector.broadcast %4 : vector<1x64xf32> to vector<16x64xf32>
    %6 = arith.addf %3, %5 : vector<16x64xf32>
    %cst_5 = arith.constant 5.000000e-01 : f32
    %7 = vector.broadcast %cst_5 : f32 to vector<16x64xf32>
    %8 = arith.mulf %6, %7 : vector<16x64xf32>
    %cst_6 = arith.constant 0.707106769 : f32
    %9 = vector.broadcast %cst_6 : f32 to vector<16x64xf32>
    %10 = arith.mulf %6, %9 : vector<16x64xf32>
    %11 = math.erf %10 : vector<16x64xf32>
    %cst_7 = arith.constant 1.000000e+00 : f32
    %12 = vector.broadcast %cst_7 : f32 to vector<16x64xf32>
    %13 = arith.addf %12, %11 : vector<16x64xf32>
    %14 = arith.mulf %8, %13 : vector<16x64xf32>
    %c0_8 = arith.constant 0 : index
    %c0_9 = arith.constant 0 : index
    %15 = vector.load %arg5[%c0_8, %c0_9] : memref<16x64xf32, #tpu.memory_space<vmem>>, vector<16x64xf32>
    tpu.vector_store %arg5[%c0_8, %c0_9], %14 {strides = array<i32>} : memref<16x64xf32, #tpu.memory_space<vmem>>, vector<16x64xf32>,
    return
  }
  func.func @transform_0(%arg0: i32, %arg1: i32) -> (i32, i32) {
    %c0_i32 = arith.constant 0 : i32
    %c0_i32_0 = arith.constant 0 : i32
    return %arg1, %c0_i32 : i32, i32
  }
  func.func @transform_1(%arg0: i32, %arg1: i32) -> (i32, i32) {
    %c0_i32 = arith.constant 0 : i32
    %c0_i32_0 = arith.constant 0 : i32
    return %c0_i32, %arg0 : i32, i32
  }
  func.func @transform_2(%arg0: i32, %arg1: i32) -> (i32, i32) {
    %c0_i32 = arith.constant 0 : i32
    %c0_i32_0 = arith.constant 0 : i32
    return %c0_i32, %arg0 : i32, i32
  }
  func.func @transform_3(%arg0: i32, %arg1: i32) -> (i32, i32) {
    %c0_i32 = arith.constant 0 : i32
    return %arg1, %arg0 : i32, i32
  }
}

</mosaic_0001>

<bundles_post_ra>
// kernel: tpu_custom_call.1
= control target key start
LH: loop header
LB: loop body
LE: loop exit
PB: predicated region body
PF: predicated region fallthrough
CT: control target
= control target key end

     0   :  { %8 = vsyncpa [#allocation3], 0  ;;  %s289_s0 = inlined_call_operand.hbm [shape: f32[16,32], index: 0, kind: input, shape index: {}]   ;;  %s290_s1 = inlined_call_operand.hbm [shape: bf16[32,64], index: 1, kind: input, shape index: {}]   ;;  %s291_s2 = inlined_call_operand.vmem [shape: f32[1,64], index: 2, kind: input, shape index: {}]   ;;  %s292_s3 = inlined_call_operand.hbm [shape: f32[16,64], index: 3, kind: output, shape index: {}]  }
   0x1   :  { %9 = vsyncpa [#allocation6], 0 }
   0x2   :  { %10 = vsyncpa [#allocation4], 0  ;;  %s242_s12 = smov [#allocation2]  }
   0x3   :  { %s16_s13 = sshll.u32 %s242_s12, 4  ;;  %s17_s13 = int_to_ptr.vmem [resolvable:$true] %s16_s13 }
   0x4   :  { %s184_s14 = scalar_lea.vmem %s17_s13, 256  ;;  %p189_p1 = scmp.lt.s32.totalorder %s17_s13, %s17_s13 }
   0x5   :  { %p185_p0 = scmp.ne.s32.totalorder %s17_s13, %s184_s14  ;;  %p190_p2 = scmp.lt.s32.totalorder %s184_s14, %s184_s14 }
   0x7   :  { %p191_p3 = por %p190_p2, %p189_p1 }
   0x9   :  { %p192_p4 = pnand %p191_p3, %p185_p0 }
   0xb   :  { %195 = shalt.err (!%p192_p4)
}
   0xc   :  { %s243_s15 = smov 128   ;;  %s244_s16 = smov 8  }
   0xd   :  { %22 = dma.hbm_to_vmem [thread:$0]  %s289_s0, 256, %s17_s13, [#allocation3], %s243_s15, %s243_s15, %s244_s16  }
   0xe   :  { %s245_s19 = smov [#allocation5]  }
   0xf   :  { %s28_s20 = sshll.u32 %s245_s19, 4  ;;  %s29_s20 = int_to_ptr.vmem [resolvable:$true] %s28_s20 }
  0x10   :  { %s204_s21 = scalar_lea.vmem %s29_s20, 256  ;;  %p209_p6 = scmp.lt.s32.totalorder %s29_s20, %s29_s20 }
  0x11   :  { %p205_p5 = scmp.ne.s32.totalorder %s29_s20, %s204_s21  ;;  %p210_p7 = scmp.lt.s32.totalorder %s204_s21, %s204_s21 }
  0x13   :  { %p211_p8 = por %p210_p7, %p209_p6 }
  0x15   :  { %p212_p9 = pnand %p211_p8, %p205_p5 }
  0x17   :  { %215 = shalt.err (!%p212_p9)
}
  0x18   :  { %s246_s22 = smov 64   ;;  %s247_s23 = smov 4  }
  0x19   :  { %34 = dma.hbm_to_vmem [thread:$0]  %s290_s1, 256, %s29_s20, [#allocation6], %s246_s22, %s246_s22, %s247_s23  }
  0x1a   :  { %236 = dma.done.wait [#allocation3], 256  }
  0x1b   :  { %237 = vsyncadd [#allocation3], 4294967040 }
  0x1c   :  { %238 = dma.done.wait [#allocation6], 256  }
  0x1d   :  { %239 = vsyncadd [#allocation6], 4294967040  ;;  %v248_v0 = vmov 0.0   ;;  %vm249_vm0 = vmmov 0   ;;  %v170_v1 = vld [vmem:[#allocation5 + $0x8] sm:$0xff]   ;;  %v171_v2 = vld [vmem:[#allocation5] sm:$0xff]  }
  0x1e   :  { %153 = vmatprep.subr.bf16.mxu0 %v248_v0  ;;  %157 = vmatprep.mubr.msk.bf16.mxu0 %vm249_vm0, %v248_v0  ;;  %v44_v3 = vld [vmem:[#allocation2] sm:$0xff]  ;;  %v45_v4 = vld [vmem:[#allocation2 + $0x8] sm:$0xff]  ;;  %vm70_vm1 = vcmask 261120   ;;  %vm125_vm2 = vcmask 523264   ;;  %s250_s26 = smov [#allocation7]  }
  0x1f   :  { %154 = vmatpush3.bf16.msra.mxu0 %v170_v1  ;;  %v46_v5 = vpack.c.bf16 %v45_v4, %v44_v3  ;;  %v146_v6 = vld [vmem:[%s291_s2] ss:$0 sm:$0xff]  ;;  %s133_s27 = sshll.u32 %s250_s26, 4  ;;  %s134_s27 = int_to_ptr.vmem [resolvable:$true] %s133_s27 }
  0x20   :  { %155 = vmatprep.subr.bf16.mxu0 %v248_v0  ;;  %s216_s2 = scalar_lea.vmem %s134_s27, 256  ;;  %p221_p11 = scmp.lt.s32.totalorder %s134_s27, %s134_s27 }
  0x21   :  { %p217_p10 = scmp.ne.s32.totalorder %s134_s27, %s216_s2  ;;  %p222_p12 = scmp.lt.s32.totalorder %s216_s2, %s216_s2 }
  0x23   :  { %156 = vmatpush3.bf16.msra.mxu0 %v171_v2  ;;  %p223_p13 = por %p222_p12, %p221_p11 }
  0x25   :  { %p224_p0 = pnand %p223_p13, %p217_p10 }
  0x26   :  { %158 = vmatmul.mubr.msk.bf16.vlgmr.msra.gmra.mxu0 %vm70_vm1, %v46_v5 }
  0xe6   :  { %v108_v7 = vpop.f32.mrf.mxu0 }
  0xe7   :  { %v109_v8 = vadd.f32 %v146_v6, %v108_v7 }
  0xe8   :  { %v159_v9 = vpop.f32.mrf.mxu0 }
  0xe9   :  { %v117_v10 = vmul.f32 0.70710677, %v109_v8  ;;  %v115_v16 = vmul.f32 0.5, %v109_v8 }
  0xea   :  { %v111_v11 = vpop.f32.mrf.mxu0 }
  0xeb   :  { %172 = verf.f32 %v117_v10  ;;  %v112_v12 = vadd.f32 %v146_v6, %v111_v11 }
  0xec   :  { %v160_v13 = vpop.f32.mrf.mxu0 }
  0xed   :  { %v118_v14 = vmul.f32 0.70710677, %v112_v12  ;;  %v116_v20 = vmul.f32 0.5, %v112_v12 }
  0xef   :  { %174 = verf.f32 %v118_v14 }
  0xf8   :  { %v173_v15 = vpop.eup %172 }
  0xf9   :  { %v121_v17 = vadd.f32 1.0, %v173_v15 }
  0xfb   :  { %v123_v18 = vmul.f32 %v121_v17, %v115_v16 }
  0xfc   :  { %v175_v19 = vpop.eup %174 }
  0xfd   :  { %v122_v21 = vadd.f32 1.0, %v175_v19  ;;  %126 = vst.msk [vmem:[#allocation7] sm:$0xff] %vm125_vm2, %v123_v18 }
  0xff   :  { %v124_v22 = vmul.f32 %v122_v21, %v116_v20 }
 0x101   :  { %127 = vst.msk [vmem:[#allocation7 + $0x8] sm:$0xff] %vm125_vm2, %v124_v22 }
 0x102   :  { %227 = shalt.err (!%p224_p0)
}
 0x103   :  { %139 = dma.vmem_to_hbm [thread:$0]  %s134_s27, 256, %s292_s3, [#allocation4], %s243_s15, %s243_s15, %s244_s16  }
 0x104   :  { %240 = dma.done.wait [#allocation4], 256  }
 0x105   :  { %241 = vsyncadd [#allocation4], 4294967040 }
 0x106   :  { %143 = vsyncpa [#allocation3], 1 }
 0x107   :  { %144 = vsyncpa [#allocation6], 1 }
 0x108   :  { %145 = vsyncpa [#allocation4], 1 }

</bundles_post_ra>
